<compile_context>
chip_gen: v6e
topology: v6e:2x2x1
jax: 0.10.0
libtpu: 0.0.40
codegen_flags: <defaults>
</compile_context>

<pallas_src>
import functools

import jax
import jax.numpy as jnp
from jax.experimental import pallas as pl
from jax.experimental.pallas import tpu as pltpu


def _loss_kernel(x_ref, t_ref, inter_ref, denom_ref, ce_ref, *,
                 n_pixels, needs_mask):
    """Per (sample, pixel-tile) grid step: softmax + CE + dice partial sums.

    x_ref:     (1, C, TP)  logits tile (any float dtype; cast to f32 here)
    t_ref:     (1, 1, TP)  int32 target class per pixel (lane-dense)
    inter_ref: (1, C, 1)   f32 accumulator: sum_pixels (softmax * onehot)^2
    denom_ref: (1, C, 1)   f32 accumulator: sum_pixels (softmax + onehot)
    ce_ref:    (1, 1, 1)   f32 accumulator: sum_pixels cross-entropy
    """
    j = pl.program_id(1)

    @pl.when(j == 0)
    def _():
        inter_ref[...] = jnp.zeros_like(inter_ref)
        denom_ref[...] = jnp.zeros_like(denom_ref)
        ce_ref[...] = jnp.zeros_like(ce_ref)

    x = x_ref[0].astype(jnp.float32)              # (C, TP)
    t = t_ref[0]                                  # (1, TP) int32
    c, tp = x.shape

    # softmax over the class (sublane) axis; one reciprocal per pixel, then a
    # broadcast multiply (C x fewer divides than prob = e / s).
    m = jnp.max(x, axis=0, keepdims=True)         # (1, TP)
    e = jnp.exp(x - m)                            # (C, TP)
    s = jnp.sum(e, axis=0, keepdims=True)         # (1, TP)
    inv_s = 1.0 / s                               # (1, TP)
    prob = e * inv_s                              # softmax probabilities

    # one-hot of the target along the class (sublane) axis
    cls = jax.lax.broadcasted_iota(jnp.int32, (c, tp), 0)
    onehot = (cls == t).astype(jnp.float32)       # (C, TP)

    # cross-entropy per pixel: logsumexp(x) - x[target]
    x_t = jnp.sum(x * onehot, axis=0, keepdims=True)    # (1, TP)
    ce = (m - x_t) + jnp.log(s)                          # (1, TP)

    if needs_mask:
        # Zero out contributions from padded pixels (only compiled in when
        # H*W does not tile evenly); static Python branch, no cost otherwise.
        pix = jax.lax.broadcasted_iota(jnp.int32, (1, tp), 1) + j * tp
        valid = (pix < n_pixels).astype(jnp.float32)     # (1, TP)
        onehot = onehot * valid
        prob = prob * valid
        ce = ce * valid

    ce_ref[...] = ce_ref[...] + jnp.sum(ce)

    # soft-dice partial sums per class, reduced over the pixel (lane) axis;
    # results stay in their natural (C sublanes, 1 lane) layout.
    # (quirky reference branch: intersect uses (softmax * onehot) ** 2)
    inter_part = jnp.sum(jnp.square(prob) * onehot, axis=1, keepdims=True)  # (C, 1)
    denom_part = jnp.sum(prob + onehot, axis=1, keepdims=True)              # (C, 1)
    inter_ref[...] = inter_ref[...] + inter_part.reshape(1, c, 1)
    denom_ref[...] = denom_ref[...] + denom_part.reshape(1, c, 1)


def _pick_pixel_tile(p, c):
    """Pixel-tile size (multiple of 128) and padded pixel count."""
    # Keep each (C, TP) f32 in-kernel intermediate around ~1 MiB (the sublane
    # dim pads to 8 in VMEM), so the double-buffered inputs plus all live f32
    # temporaries stay comfortably inside a 32 MiB VMEM budget on every
    # generation (v7x only has 64 MiB physical per TC).
    target_bytes = 1 * 1024 * 1024
    c_pad = max(((c + 7) // 8) * 8, 8)
    tp_cap = max(128, (target_bytes // (c_pad * 4)) // 128 * 128)
    p_min = ((p + 127) // 128) * 128
    if p_min <= tp_cap:
        return p_min, p_min
    p_pad = ((p + tp_cap - 1) // tp_cap) * tp_cap
    return tp_cap, p_pad


@functools.partial(jax.jit, static_argnames=("smooth", "smooth_in_nom"))
def dc_and_ce_loss(net_output, target, smooth=1.0, smooth_in_nom=1.0):
    """DC_and_CE_loss forward: cross-entropy(mean) + soft-dice, aggregate='sum'."""
    n, c, h, w = net_output.shape
    p = h * w
    tp, p_pad = _pick_pixel_tile(p, c)

    # NCHW -> (N, C, P): a free reshape (no transpose / extra HBM pass).
    # Keep the input dtype; the kernel casts to f32.
    x = net_output.reshape(n, c, p)
    # lane-dense targets: (N, 1, P). Handles both (N,H,W) and (N,1,H,W).
    t = target.astype(jnp.int32).reshape(n, 1, p)
    if p_pad != p:
        # Only taken when H*W is not a multiple of the tile; padded pixels are
        # masked out inside the kernel.
        x = jnp.pad(x, ((0, 0), (0, 0), (0, p_pad - p)))
        t = jnp.pad(t, ((0, 0), (0, 0), (0, p_pad - p)))

    grid = (n, p_pad // tp)
    kernel = functools.partial(_loss_kernel, n_pixels=p,
                               needs_mask=(p_pad != p))

    inter, denom, ce_sum = pl.pallas_call(
        kernel,
        out_shape=(
            jax.ShapeDtypeStruct((n, c, 1), jnp.float32),
            jax.ShapeDtypeStruct((n, c, 1), jnp.float32),
            jax.ShapeDtypeStruct((n, 1, 1), jnp.float32),
        ),
        grid_spec=pltpu.PrefetchScalarGridSpec(
            num_scalar_prefetch=0,
            grid=grid,
            in_specs=[
                pl.BlockSpec((1, c, tp), lambda i, j: (i, 0, j)),
                pl.BlockSpec((1, 1, tp), lambda i, j: (i, 0, j)),
            ],
            out_specs=[
                pl.BlockSpec((1, c, 1), lambda i, j: (i, 0, 0)),
                pl.BlockSpec((1, c, 1), lambda i, j: (i, 0, 0)),
                pl.BlockSpec((1, 1, 1), lambda i, j: (i, 0, 0)),
            ],
        ),
        compiler_params=pltpu.CompilerParams(
            # Sample axis is parallel (feeds both TCs on v7x when N >= 2);
            # the pixel-tile axis reduces into per-sample accumulators, so it
            # must be 'arbitrary'.
            dimension_semantics=("parallel", "arbitrary"),
            vmem_limit_bytes=32 * 1024 * 1024,
        ),
    )(x, t)

    inter = inter.reshape(n, c)
    denom = denom.reshape(n, c)

    # soft_dice: (-((2*intersect + smooth_in_nom) / (denom + smooth))).mean()
    dc_loss = jnp.mean(-((2.0 * inter + smooth_in_nom) / (denom + smooth)))
    # CrossentropyND: mean over all (real, unpadded) pixels
    ce_loss = jnp.sum(ce_sum) / float(n * p)

    return ce_loss + dc_loss  # aggregate='sum'


def _reference_loss(net_output, target, smooth=1.0, smooth_in_nom=1.0):
    """Pure-JAX reference mirroring the PyTorch module (for sanity checking)."""
    n, c, h, w = net_output.shape
    x = net_output.astype(jnp.float32)
    xm = jnp.max(x, axis=1, keepdims=True)
    e = jnp.exp(x - xm)
    sm = e / jnp.sum(e, axis=1, keepdims=True)
    onehot = jax.nn.one_hot(target.astype(jnp.int32), c, axis=1, dtype=jnp.float32)
    intersect = jnp.sum((sm * onehot) ** 2, axis=(2, 3))
    denom = jnp.sum(sm + onehot, axis=(2, 3))
    dc = jnp.mean(-((2.0 * intersect + smooth_in_nom) / (denom + smooth)))
    logits = jnp.transpose(x, (0, 2, 3, 1)).reshape(-1, c)
    tgt = target.astype(jnp.int32).reshape(-1)
    logz = jax.scipy.special.logsumexp(logits, axis=-1)
    ce = jnp.mean(logz - jnp.take_along_axis(logits, tgt[:, None], axis=-1)[:, 0])
    return ce + dc


if __name__ == "__main__":
    key = jax.random.PRNGKey(0)
    k1, k2 = jax.random.split(key)

    N, C, H, W = 2, 4, 16, 16
    net_output = jax.random.normal(k1, (N, C, H, W), dtype=jnp.float32)
    target = jax.random.randint(k2, (N, H, W), 0, C, dtype=jnp.int32)

    loss = dc_and_ce_loss(net_output, target)
    loss = jax.block_until_ready(loss)

    ref = jax.block_until_ready(_reference_loss(net_output, target))
    assert jnp.allclose(loss, ref, atol=1e-4, rtol=1e-4), (loss, ref)

    print("KERNEL_OK")
</pallas_src>

<mosaic_0001>
module attributes {stable_mosaic.version = 11 : i64} {
  func.func @_loss_kernel(%arg0: i32, %arg1: i32, %arg2: memref<1x4x256xf32, #tpu.memory_space<vmem>>, %arg3: memref<1x1x256xi32, #tpu.memory_space<vmem>>, %arg4: memref<1x4x1xf32, #tpu.memory_space<vmem>>, %arg5: memref<1x4x1xf32, #tpu.memory_space<vmem>>, %arg6: memref<1x1x1xf32, #tpu.memory_space<vmem>>) attributes {dimension_semantics = [#tpu.dimension_semantics<parallel>, #tpu.dimension_semantics<arbitrary>], iteration_bounds = array<i64: 2, 1>, scalar_prefetch = 0 : i64, scratch_operands = 0 : i64, tpu.core_type = #tpu.core_type<tc>, window_params = [{transform_indices = @transform_0, window_bounds = array<i64: 1, 4, 256>}, {transform_indices = @transform_1, window_bounds = array<i64: 1, 1, 256>}, {transform_indices = @transform_2, window_bounds = array<i64: 1, 4, 1>}, {transform_indices = @transform_3, window_bounds = array<i64: 1, 4, 1>}, {transform_indices = @transform_4, window_bounds = array<i64: 1, 1, 1>}]} {
    %c0_i32 = arith.constant 0 : i32
    %0 = arith.cmpi eq, %arg1, %c0_i32 : i32
    %1 = arith.extui %0 : i1 to i32
    %c0_i32_0 = arith.constant 0 : i32
    %2 = arith.cmpi ne, %1, %c0_i32_0 : i32
    scf.if %2 {
      %cst_30 = arith.constant 0.000000e+00 : f32
      %52 = vector.broadcast %cst_30 : f32 to vector<1x4x1xf32>
      %c0_31 = arith.constant 0 : index
      %c0_32 = arith.constant 0 : index
      %c0_33 = arith.constant 0 : index
      %53 = vector.load %arg4[%c0_31, %c0_32, %c0_33] : memref<1x4x1xf32, #tpu.memory_space<vmem>>, vector<1x4x1xf32>
      tpu.vector_store %arg4[%c0_31, %c0_32, %c0_33], %52 {strides = array<i32>} : memref<1x4x1xf32, #tpu.memory_space<vmem>>, vector<1x4x1xf32>,
      %cst_34 = arith.constant 0.000000e+00 : f32
      %54 = vector.broadcast %cst_34 : f32 to vector<1x4x1xf32>
      %c0_35 = arith.constant 0 : index
      %c0_36 = arith.constant 0 : index
      %c0_37 = arith.constant 0 : index
      %55 = vector.load %arg5[%c0_35, %c0_36, %c0_37] : memref<1x4x1xf32, #tpu.memory_space<vmem>>, vector<1x4x1xf32>
      tpu.vector_store %arg5[%c0_35, %c0_36, %c0_37], %54 {strides = array<i32>} : memref<1x4x1xf32, #tpu.memory_space<vmem>>, vector<1x4x1xf32>,
      %cst_38 = arith.constant 0.000000e+00 : f32
      %56 = vector.broadcast %cst_38 : f32 to vector<1x1x1xf32>
      %c0_39 = arith.constant 0 : index
      %c0_40 = arith.constant 0 : index
      %c0_41 = arith.constant 0 : index
      %57 = vector.load %arg6[%c0_39, %c0_40, %c0_41] : memref<1x1x1xf32, #tpu.memory_space<vmem>>, vector<1x1x1xf32>
      tpu.vector_store %arg6[%c0_39, %c0_40, %c0_41], %56 {strides = array<i32>} : memref<1x1x1xf32, #tpu.memory_space<vmem>>, vector<1x1x1xf32>,
    } else {
    }
    %c0 = arith.constant 0 : index
    %c0_1 = arith.constant 0 : index
    %c0_2 = arith.constant 0 : index
    %3 = vector.load %arg2[%c0, %c0_1, %c0_2] : memref<1x4x256xf32, #tpu.memory_space<vmem>>, vector<1x4x256xf32>
    %4 = vector.shape_cast %3 : vector<1x4x256xf32> to vector<4x256xf32>
    %c0_3 = arith.constant 0 : index
    %c0_4 = arith.constant 0 : index
    %c0_5 = arith.constant 0 : index
    %5 = vector.load %arg3[%c0_3, %c0_4, %c0_5] : memref<1x1x256xi32, #tpu.memory_space<vmem>>, vector<1x1x256xi32>
    %6 = vector.shape_cast %5 : vector<1x1x256xi32> to vector<1x256xi32>
    %cst = arith.constant dense<0xFF800000> : vector<256xf32>
    %7 = vector.multi_reduction <maximumf>, %4, %cst [0] : vector<4x256xf32> to vector<256xf32>
    %8 = vector.shape_cast %7 : vector<256xf32> to vector<1x256xf32>
    %9 = vector.broadcast %8 : vector<1x256xf32> to vector<4x256xf32>
    %10 = arith.subf %4, %9 : vector<4x256xf32>
    %11 = math.exp %10 : vector<4x256xf32>
    %cst_6 = arith.constant dense<0.000000e+00> : vector<256xf32>
    %12 = vector.multi_reduction <add>, %11, %cst_6 [0] : vector<4x256xf32> to vector<256xf32>
    %13 = vector.shape_cast %12 : vector<256xf32> to vector<1x256xf32>
    %cst_7 = arith.constant 1.000000e+00 : f32
    %14 = vector.broadcast %cst_7 : f32 to vector<1x256xf32>
    %15 = arith.divf %14, %13 : vector<1x256xf32>
    %16 = vector.broadcast %15 : vector<1x256xf32> to vector<4x256xf32>
    %17 = arith.mulf %11, %16 : vector<4x256xf32>
    %18 = tpu.iota {dimensions = array<i32: 0>} : vector<4x256xi32>
    %19 = vector.broadcast %6 : vector<1x256xi32> to vector<4x256xi32>
    %20 = arith.cmpi eq, %18, %19 : vector<4x256xi32>
    %21 = arith.extui %20 : vector<4x256xi1> to vector<4x256xi32>
    %22 = arith.sitofp %21 : vector<4x256xi32> to vector<4x256xf32>
    %23 = arith.mulf %4, %22 : vector<4x256xf32>
    %cst_8 = arith.constant dense<0.000000e+00> : vector<256xf32>
    %24 = vector.multi_reduction <add>, %23, %cst_8 [0] : vector<4x256xf32> to vector<256xf32>
    %25 = vector.shape_cast %24 : vector<256xf32> to vector<1x256xf32>
    %26 = arith.subf %8, %25 : vector<1x256xf32>
    %27 = math.log %13 : vector<1x256xf32>
    %28 = arith.addf %26, %27 : vector<1x256xf32>
    %c0_9 = arith.constant 0 : index
    %c0_10 = arith.constant 0 : index
    %c0_11 = arith.constant 0 : index
    %29 = vector.load %arg6[%c0_9, %c0_10, %c0_11] : memref<1x1x1xf32, #tpu.memory_space<vmem>>, vector<1x1x1xf32>
    %30 = vector.shape_cast %28 : vector<1x256xf32> to vector<1x1x256xf32>
    %cst_12 = arith.constant dense<0.000000e+00> : vector<1xf32>
    %31 = vector.multi_reduction <add>, %30, %cst_12 [1, 2] : vector<1x1x256xf32> to vector<1xf32>
    %32 = vector.shape_cast %31 : vector<1xf32> to vector<1x1x1xf32>
    %33 = vector.extract %32[0, 0, 0] : f32 from vector<1x1x1xf32>
    %34 = vector.broadcast %33 : f32 to vector<1x1x1xf32>
    %35 = arith.addf %29, %34 : vector<1x1x1xf32>
    %c0_13 = arith.constant 0 : index
    %c0_14 = arith.constant 0 : index
    %c0_15 = arith.constant 0 : index
    %36 = vector.load %arg6[%c0_13, %c0_14, %c0_15] : memref<1x1x1xf32, #tpu.memory_space<vmem>>, vector<1x1x1xf32>
    tpu.vector_store %arg6[%c0_13, %c0_14, %c0_15], %35 {strides = array<i32>} : memref<1x1x1xf32, #tpu.memory_space<vmem>>, vector<1x1x1xf32>,
    %37 = arith.mulf %17, %17 : vector<4x256xf32>
    %38 = arith.mulf %37, %22 : vector<4x256xf32>
    %cst_16 = arith.constant dense<0.000000e+00> : vector<4xf32>
    %39 = vector.multi_reduction <add>, %38, %cst_16 [1] : vector<4x256xf32> to vector<4xf32>
    %40 = vector.shape_cast %39 : vector<4xf32> to vector<4x1xf32>
    %41 = arith.addf %17, %22 : vector<4x256xf32>
    %cst_17 = arith.constant dense<0.000000e+00> : vector<4xf32>
    %42 = vector.multi_reduction <add>, %41, %cst_17 [1] : vector<4x256xf32> to vector<4xf32>
    %43 = vector.shape_cast %42 : vector<4xf32> to vector<4x1xf32>
    %c0_18 = arith.constant 0 : index
    %c0_19 = arith.constant 0 : index
    %c0_20 = arith.constant 0 : index
    %44 = vector.load %arg4[%c0_18, %c0_19, %c0_20] : memref<1x4x1xf32, #tpu.memory_space<vmem>>, vector<1x4x1xf32>
    %45 = vector.shape_cast %40 : vector<4x1xf32> to vector<1x4x1xf32>
    %46 = arith.addf %44, %45 : vector<1x4x1xf32>
    %c0_21 = arith.constant 0 : index
    %c0_22 = arith.constant 0 : index
    %c0_23 = arith.constant 0 : index
    %47 = vector.load %arg4[%c0_21, %c0_22, %c0_23] : memref<1x4x1xf32, #tpu.memory_space<vmem>>, vector<1x4x1xf32>
    tpu.vector_store %arg4[%c0_21, %c0_22, %c0_23], %46 {strides = array<i32>} : memref<1x4x1xf32, #tpu.memory_space<vmem>>, vector<1x4x1xf32>,
    %c0_24 = arith.constant 0 : index
    %c0_25 = arith.constant 0 : index
    %c0_26 = arith.constant 0 : index
    %48 = vector.load %arg5[%c0_24, %c0_25, %c0_26] : memref<1x4x1xf32, #tpu.memory_space<vmem>>, vector<1x4x1xf32>
    %49 = vector.shape_cast %43 : vector<4x1xf32> to vector<1x4x1xf32>
    %50 = arith.addf %48, %49 : vector<1x4x1xf32>
    %c0_27 = arith.constant 0 : index
    %c0_28 = arith.constant 0 : index
    %c0_29 = arith.constant 0 : index
    %51 = vector.load %arg5[%c0_27, %c0_28, %c0_29] : memref<1x4x1xf32, #tpu.memory_space<vmem>>, vector<1x4x1xf32>
    tpu.vector_store %arg5[%c0_27, %c0_28, %c0_29], %50 {strides = array<i32>} : memref<1x4x1xf32, #tpu.memory_space<vmem>>, vector<1x4x1xf32>,
    return
  }
  func.func @transform_0(%arg0: i32, %arg1: i32) -> (i32, i32, i32) {
    %c0_i32 = arith.constant 0 : i32
    %c0_i32_0 = arith.constant 0 : i32
    return %arg0, %c0_i32, %arg1 : i32, i32, i32
  }
  func.func @transform_1(%arg0: i32, %arg1: i32) -> (i32, i32, i32) {
    %c0_i32 = arith.constant 0 : i32
    %c0_i32_0 = arith.constant 0 : i32
    return %arg0, %c0_i32, %arg1 : i32, i32, i32
  }
  func.func @transform_2(%arg0: i32, %arg1: i32) -> (i32, i32, i32) {
    %c0_i32 = arith.constant 0 : i32
    %c0_i32_0 = arith.constant 0 : i32
    %c0_i32_1 = arith.constant 0 : i32
    return %arg0, %c0_i32, %c0_i32_0 : i32, i32, i32
  }
  func.func @transform_3(%arg0: i32, %arg1: i32) -> (i32, i32, i32) {
    %c0_i32 = arith.constant 0 : i32
    %c0_i32_0 = arith.constant 0 : i32
    %c0_i32_1 = arith.constant 0 : i32
    return %arg0, %c0_i32, %c0_i32_0 : i32, i32, i32
  }
  func.func @transform_4(%arg0: i32, %arg1: i32) -> (i32, i32, i32) {
    %c0_i32 = arith.constant 0 : i32
    %c0_i32_0 = arith.constant 0 : i32
    %c0_i32_1 = arith.constant 0 : i32
    return %arg0, %c0_i32, %c0_i32_0 : i32, i32, i32
  }
}

</mosaic_0001>

<bundles_post_ra>
// kernel: dc_and_ce_loss.1
= control target key start
LH: loop header
LB: loop body
LE: loop exit
PB: predicated region body
PF: predicated region fallthrough
CT: control target
= control target key end

     0   :  { %s669_s15 = smov 0   ;;  %s671_s16 = smov 0   ;;  %s738_s0 = inlined_call_operand.vmem [shape: f32[2,4,256], index: 0, kind: input, shape index: {}]   ;;  %s739_s1 = inlined_call_operand.vmem [shape: s32[2,1,256], index: 1, kind: input, shape index: {}]   ;;  %s740_s2 = inlined_call_operand.vmem [shape: f32[2,4,1], index: 2, kind: output, shape index: {0}]   ;;  %s741_s3 = inlined_call_operand.vmem [shape: f32[2,4,1], index: 3, kind: output, shape index: {1}]   ;;  %s742_s4 = inlined_call_operand.vmem [shape: f32[2,1,1], index: 4, kind: output, shape index: {2}]  }
   0x1   :  { %s673_s17 = smov 0  }
   0x2 LB: > { %s27_s18 = sadd.s32 1, %s637_s16  ;;  %p570_p0 = scmp.ge.s32.totalorder %s641_s17, 1  ;;  %s641_s17 = sphi %s673_s17, %s15_s17   ;;  %s637_s16 = sphi %s671_s16, %s744_s16   ;;  %s633_s15 = sphi %s669_s15, %s743_s15  }
   0x3   : > { %p29_p1 = scmp.ge.s32.totalorder %s27_s18, 2  ;;  %p202_p2 = scmp.lt.s32.totalorder %s641_s17, 3 }
   0x5   : > { %s746_s18 = smov (%p29_p1, %s27_s18), 0  ;;  %p203_p3 = pnand %p570_p0, %p202_p2 }
   0x6   : > { %p247_p4 = scmp.lt.s32.totalorder (!%p203_p3), %s633_s15, 1 }
   0x7   : > { %206 = sbr.rel (%p203_p3) target bundleno = 291 (0x123), region = 28 }
   0xc   : > { %s748_s15 = smov (!%p247_p4, %s633_s15), 1  ;;  %vm290_vm0 = vcmask 1043456   ;;  %v338_v4 = vlaneseq  ;;  %v643_v26 = vmov 0.0   ;;  %vm385_vm3 = vcmask 1040384  }
   0xd   : > { %s580_s19 = sshll.u32 %s748_s15, 3  ;;  %s573_s23 = sshll.u32 %s748_s15, 1  ;;  %vm283_vm4 = vcmask 0   ;;  %vm280_vm5 = vcmask 3072  }
   0xe   : > { %s254_s22 = scalar_lea.vmem %s738_s0, %s580_s19  ;;  %v339_v10 = vshrl.u32 %v338_v4, 7  ;;  %s263_s26 = scalar_lea.vmem %s739_s1, %s573_s23 }
   0xf   : > { %v285_v0 = vld [vmem:[%s254_s22] sm:$0xff]  ;;  %s275_s29 = scalar_lea.vmem %s742_s4, %s748_s15  ;;  %s574_s30 = sshll.u32 %s748_s15, 2 }
  0x10   : > { %v288_v1 = vcombine.high %v285_v0, %v285_v0  ;;  %v291_v2 = vsel %vm290_vm0, %v285_v0, -inf  ;;  %v342_v15 = vsub.s32 0, %v339_v10  ;;  %v346_v16 = vsub.s32 1, %v339_v10  ;;  %v286_v17 = vld [vmem:[%s263_s26] sm:$0x3]  ;;  %s272_s7 = scalar_lea.vmem %s741_s3, %s574_s30  ;;  %s268_s10 = scalar_lea.vmem %s740_s2, %s574_s30 }
  0x11   : > { %v292_v3 = vrot.slane %v291_v2, 4  ;;  %284 = vst.msk [vmem:[%s275_s29] sm:$0x1] %vm283_vm4, %v643_v26 }
  0x12   : > { %v298_v5 = vsel %vm290_vm0, %v288_v1, -inf  ;;  %v343_v21 = vrot.slane %v286_v17, %v342_v15  ;;  %v347_v22 = vrot.slane %v286_v17, %v346_v16  ;;  %282 = vst.msk [vmem:[%s272_s7] sm:$0xf] %vm280_vm5, %v643_v26  ;;  %281 = vst.msk [vmem:[%s268_s10] sm:$0xf] %vm280_vm5, %v643_v26 }
  0x13   : > { %v293_v6 = vmax.f32 %v291_v2, %v292_v3  ;;  %v299_v7 = vrot.slane %v298_v5, 4 }
  0x14   : > { %vm348_vm1 = vcmp.eq.s32.totalorder %v339_v10, %v343_v21  ;;  %vm349_vm2 = vcmp.eq.s32.totalorder %v339_v10, %v347_v22 }
  0x15   : > { %v294_v8 = vrot.slane %v293_v6, 2  ;;  %v300_v9 = vmax.f32 %v298_v5, %v299_v7  ;;  %v576_v27 = vsel %vm348_vm1, 1.0, %v643_v26  ;;  %v577_v28 = vsel %vm349_vm2, 1.0, %v643_v26 }
  0x16   : > { %v356_v29 = vcombine.low %v576_v27, %v577_v28 }
  0x17   : > { %v295_v11 = vmax.f32 %v293_v6, %v294_v8  ;;  %v301_v12 = vrot.slane %v300_v9, 2 }
  0x18   : > { %v358_v30 = vmul.f32 %v356_v29, %v285_v0 }
  0x19   : > { %v296_v13 = vrot.slane %v295_v11, 1  ;;  %v302_v14 = vmax.f32 %v300_v9, %v301_v12  ;;  %v425_v28 = vld [vmem:[%s272_s7] sm:$0xf] }
  0x1a   : > { %v360_v31 = vcombine.high %v358_v30, %v358_v30  ;;  %v362_v33 = vsel %vm290_vm0, %v358_v30, 0.0 }
  0x1b   : > { %v297_v18 = vmax.f32 %v295_v11, %v296_v13  ;;  %v303_v19 = vrot.slane %v302_v14, 1  ;;  %v363_v39 = vrot.slane %v362_v33, 4 }
  0x1c   : > { %v369_v36 = vsel %vm290_vm0, %v360_v31, 0.0  ;;  %v421_v31 = vld [vmem:[%s268_s10] sm:$0xf] }
  0x1d   : > { %v304_v20 = vmax.f32 %v302_v14, %v303_v19  ;;  %v370_v42 = vrot.slane %v369_v36, 4  ;;  %v364_v45 = vadd.f32 %v363_v39, %v362_v33 }
  0x1f   : > { %v307_v23 = vcombine.low %v297_v18, %v304_v20  ;;  %v371_v48 = vadd.f32 %v370_v42, %v369_v36  ;;  %v365_v51 = vrot.slane %v364_v45, 2 }
  0x21   : > { %v309_v24 = vsub.f32 %v285_v0, %v307_v23  ;;  %v372_v54 = vrot.slane %v371_v48, 2  ;;  %v366_v56 = vadd.f32 %v365_v51, %v364_v45 }
  0x23   : > { %v310_v25 = vmul.f32 1.442695, %v309_v24  ;;  %v373_v57 = vadd.f32 %v372_v54, %v371_v48  ;;  %v367_v58 = vrot.slane %v366_v56, 1 }
  0x25   : > { %609 = vpow2.f32 %v310_v25  ;;  %v374_v59 = vrot.slane %v373_v57, 1  ;;  %v368_v60 = vadd.f32 %v367_v58, %v366_v56 }
  0x27   : > { %v375_v61 = vadd.f32 %v374_v59, %v373_v57  ;;  %v376_v63 = vsub.f32 %v297_v18, %v368_v60 }
  0x29   : > { %v377_v1 = vsub.f32 %v304_v20, %v375_v61 }
  0x32   : > { %v610_v32 = vpop.eup %609 }
  0x33   : > { %v313_v34 = vcombine.high %v610_v32, %v610_v32  ;;  %v315_v35 = vsel %vm290_vm0, %v610_v32, 0.0 }
  0x34   : > { %v316_v37 = vrot.slane %v315_v35, 4 }
  0x35   : > { %v322_v38 = vsel %vm290_vm0, %v313_v34, 0.0 }
  0x36   : > { %v317_v40 = vadd.f32 %v316_v37, %v315_v35  ;;  %v323_v41 = vrot.slane %v322_v38, 4 }
  0x38   : > { %v318_v43 = vrot.slane %v317_v40, 2  ;;  %v324_v44 = vadd.f32 %v323_v41, %v322_v38  ;;  %v384_v38 = vld [vmem:[%s275_s29] sm:$0x1] }
  0x3a   : > { %v319_v46 = vadd.f32 %v318_v43, %v317_v40  ;;  %v325_v47 = vrot.slane %v324_v44, 2 }
  0x3c   : > { %v320_v49 = vrot.slane %v319_v46, 1  ;;  %v326_v50 = vadd.f32 %v325_v47, %v324_v44 }
  0x3e   : > { %v321_v52 = vadd.f32 %v320_v49, %v319_v46  ;;  %v327_v53 = vrot.slane %v326_v50, 1 }
  0x40   : > { %v328_v55 = vadd.f32 %v327_v53, %v326_v50  ;;  %611 = vrcp.f32 %v321_v52 }
  0x41   : > { %613 = vlog2.f32 %v321_v52 }
  0x42   : > { %615 = vlog2.f32 %v328_v55 }
  0x43   : > { %617 = vrcp.f32 %v328_v55 }
  0x4d   : > { %v612_v62 = vpop.eup %611 }
  0x4e   : > { %v614_v0 = vpop.eup %613 }
  0x4f   : > { %v616_v2 = vpop.eup %615  ;;  %v379_v3 = vmul.f32 0.6931472, %v614_v0 }
  0x50   : > { %v618_v4 = vpop.eup %617  ;;  %v381_v5 = vmul.f32 0.6931472, %v616_v2 }
  0x51   : > { %v382_v6 = vadd.f32 %v379_v3, %v376_v63  ;;  %v335_v7 = vcombine.low %v612_v62, %v618_v4 }
  0x52   : > { %v383_v8 = vadd.f32 %v381_v5, %v377_v1 }
  0x53   : > { %v386_v9 = vsel %vm385_vm3, %v382_v6, 0.0  ;;  %v337_v10 = vmul.f32 %v610_v32, %v335_v7 }
  0x54   : > { %v387_v11 = vsel %vm385_vm3, %v383_v8, 0.0 }
  0x55   : > { %v388_v12 = vadd.f32 %v387_v11, %v386_v9  ;;  %v412_v13 = vadd.f32 %v356_v29, %v337_v10  ;;  %v402_v14 = vmul.f32 %v337_v10, %v337_v10 }
  0x57   : > { %389 = vadd.xlane.f32.xlu0 %v388_v12  ;;  %v414_v15 = vcombine.high %v412_v13, %v412_v13  ;;  %v416_v16 = vsel %vm290_vm0, %v412_v13, 0.0  ;;  %v403_v17 = vmul.f32 %v402_v14, %v356_v29 }
  0x59   : > { %v417_v18 = vsel %vm290_vm0, %v414_v15, 0.0  ;;  %v405_v19 = vcombine.high %v403_v17, %v403_v17  ;;  %v407_v20 = vsel %vm290_vm0, %v403_v17, 0.0 }
  0x5a   : > { %v418_v21 = vadd.f32 %v417_v18, %v416_v16 }
  0x5b   : > { %v408_v22 = vsel %vm290_vm0, %v405_v19, 0.0 }
  0x5c   : > { %419 = vadd.xlane.f32.xlu1 %v418_v21  ;;  %v409_v23 = vadd.f32 %v408_v22, %v407_v20 }
  0x5e   : > { %410 = vadd.xlane.f32.xlu0 %v409_v23 }
  0xe0   : > { %v390_v24 = vpop.xlane.xlu0 %389 }
  0xe1   : > { %v391_v25 = vrot.slane %v390_v24, 4 }
  0xe3   : > { %v392_v27 = vadd.f32 %v391_v25, %v390_v24 }
  0xe5   : > { %v393_v29 = vrot.slane %v392_v27, 2  ;;  %v420_v30 = vpop.xlane.xlu1 %419 }
  0xe6   : > { %v426_v32 = vadd.f32 %v425_v28, %v420_v30 }
  0xe7   : > { %v394_v33 = vadd.f32 %v393_v29, %v392_v27  ;;  %v411_v34 = vpop.xlane.xlu0 %410 }
  0xe8   : > { %427 = vst.msk [vmem:[%s272_s7] sm:$0xf] %vm280_vm5, %v426_v32  ;;  %v422_v35 = vadd.f32 %v421_v31, %v411_v34 }
  0xe9   : > { %v395_v36 = vrot.slane %v394_v33, 1 }
  0xea   : > { %424 = vst.msk [vmem:[%s268_s10] sm:$0xf] %vm280_vm5, %v422_v35 }
  0xeb   : > { %v396_v37 = vadd.f32 %v395_v36, %v394_v33 }
  0xed   : > { %581 = vpush %v396_v37 }
 0x11e   : > { %s582_s11 = spop %581 }
 0x11f   : > { %v398_v26 = vstv %s582_s11 }
 0x120   : > { %v399_v39 = vadd.f32 %v398_v26, %v384_v38 }
 0x122   : > { %401 = vst.msk [vmem:[%s275_s29] sm:$0x1] %vm283_vm4, %v399_v39 }
 0x123 PF: > { %s15_s17 = sadd.s32 1, %s641_s17   ;;  %s743_s15 = smov %s637_s16 }
 0x124   : > { %p12_p5 = scmp.ge.s32.totalorder %s15_s17, 4   ;;  %s744_s16 = smov %s746_s18 }
 0x126   :  { %14 = sbr.rel (!%p12_p5) target bundleno = 2 (0x2), region = 89 }

</bundles_post_ra>
